<compile_context>
chip_gen: v7x
topology: tpu7x:2x2x1
jax: 0.10.0
libtpu: 0.0.40
codegen_flags: <defaults>
</compile_context>

<pallas_src>
import math
import functools

import jax
import jax.numpy as jnp
from jax.experimental import pallas as pl
from jax.experimental.pallas import tpu as pltpu


# ---------------------------------------------------------------------------
# Kernel: one (batch, head) pair per (i, j) grid point, KV tiles on axis 2.
# ---------------------------------------------------------------------------
def _flash_head_kernel(q_ref, k_ref, v_ref, o_ref, m_ref, l_ref, acc_ref, *,
                       scale_sq: float, compute_dtype):
    """
    q_ref : (n_ctx, attn_ch)  resident across the KV axis
    k_ref : (tkv,   attn_ch)
    v_ref : (tkv,   attn_ch)
    o_ref : (n_ctx, attn_ch)  written only on the last KV step
    m_ref, l_ref : (n_ctx, 1) f32 scratch; acc_ref : (n_ctx, attn_ch) f32 scratch
    """
    kv = pl.program_id(2)

    @pl.when(kv == 0)
    def _init():
        m_ref[...] = jnp.full_like(m_ref, -jnp.inf)
        l_ref[...] = jnp.zeros_like(l_ref)
        acc_ref[...] = jnp.zeros_like(acc_ref)

    # Scale applied once (scale_sq = 1/sqrt(attn_ch)), in f32, before bf16 cast.
    q = (q_ref[...] * scale_sq).astype(compute_dtype)
    k = k_ref[...].astype(compute_dtype)

    # s[t, s] = sum_c q[t, c] * k[s, c]   (NT dot_general, no explicit k.T)
    s = jax.lax.dot_general(
        q, k, dimension_numbers=(((1,), (1,)), ((), ())),
        preferred_element_type=jnp.float32)              # (n_ctx, tkv) f32

    m_prev = m_ref[...]
    m_new = jnp.maximum(m_prev, jnp.max(s, axis=-1, keepdims=True))
    alpha = jnp.exp(m_prev - m_new)
    # exp kept in f32: matches torch softmax(weight.float()) and is v5e-safe.
    e = jnp.exp(s - m_new)                               # (n_ctx, tkv) f32

    l_ref[...] = alpha * l_ref[...] + jnp.sum(e, axis=-1, keepdims=True)
    # Normalize AFTER the PV matmul: no (n_ctx, tkv) "p = e * inv" buffer.
    acc_ref[...] = alpha * acc_ref[...] + jnp.dot(
        e.astype(compute_dtype), v_ref[...].astype(compute_dtype),
        preferred_element_type=jnp.float32)              # (n_ctx, attn_ch) f32
    m_ref[...] = m_new

    @pl.when(kv == pl.num_programs(2) - 1)
    def _finalize():
        inv = pl.reciprocal(l_ref[...], approx=True)     # EUP slot, not VPU divide
        o_ref[...] = (acc_ref[...] * inv).astype(o_ref.dtype)


def _pick_kv_tile(n_ctx: int) -> int:
    """Whole-KV when it comfortably fits; otherwise the largest clean tile."""
    if n_ctx <= 512:
        return n_ctx
    for t in (512, 256, 128):
        if n_ctx % t == 0:
            return t
    # TODO(synk): masked remainder tiles when n_ctx is not a multiple of 128.
    return n_ctx


# ---------------------------------------------------------------------------
# Wrapper
# ---------------------------------------------------------------------------
def qkv_multihead_attention(qkv, *, heads: int, compute_dtype=jnp.bfloat16,
                            kv_tile=None):
    """qkv: (bs, n_ctx, heads*3*attn_ch). Returns (bs, n_ctx, heads*attn_ch)."""
    bs, n_ctx, width = qkv.shape
    assert width % (3 * heads) == 0, "width must equal heads * 3 * attn_ch"
    attn_ch = width // heads // 3
    out_width = heads * attn_ch
    scale = 1.0 / math.sqrt(math.sqrt(attn_ch))
    scale_sq = scale * scale                     # = 1/sqrt(attn_ch), q-side only

    # One XLA HBM repack: head-major, q/k/v split. Keeps all transposes out of
    # the kernel (no XLU contention with MXU pushes, no slab-sized VMEM copies).
    qkv_h = jnp.transpose(qkv.reshape(bs, n_ctx, heads, 3 * attn_ch), (0, 2, 1, 3))
    q = qkv_h[..., 0 * attn_ch:1 * attn_ch]      # (bs, heads, n_ctx, attn_ch)
    k = qkv_h[..., 1 * attn_ch:2 * attn_ch]
    v = qkv_h[..., 2 * attn_ch:3 * attn_ch]

    tkv = kv_tile if kv_tile is not None else _pick_kv_tile(n_ctx)
    assert n_ctx % tkv == 0, "kv tile must divide n_ctx"
    n_kv = n_ctx // tkv

    kernel = functools.partial(_flash_head_kernel, scale_sq=scale_sq,
                               compute_dtype=compute_dtype)

    # Generation- and dtype-aware VMEM budget.
    in_b = jnp.dtype(qkv.dtype).itemsize
    est = (2 * n_ctx * attn_ch * in_b            # q block (double-buffered)
           + 2 * 2 * tkv * attn_ch * in_b        # k, v blocks (double-buffered)
           + 2 * n_ctx * attn_ch * in_b          # out block (double-buffered)
           + (n_ctx * attn_ch + 2 * n_ctx) * 4   # acc / m / l scratch
           + 3 * n_ctx * tkv * 4                 # s, e and temporaries (f32)
           + 2 * n_ctx * attn_ch * 4             # acc-update temporaries
           + (2 * n_ctx + 2 * tkv) * attn_ch * 2)  # bf16 casts of q/k/v/e-ish
    try:
        vmem_cap = int(getattr(pltpu.get_tpu_info(), "vmem_capacity_bytes",
                               64 * 1024 * 1024))
    except Exception:
        vmem_cap = 64 * 1024 * 1024              # conservative (v7x per-TC)
    vmem_limit = int(min(max(32 * 1024 * 1024, 2 * est), (vmem_cap * 3) // 4))

    grid_spec = pltpu.PrefetchScalarGridSpec(
        num_scalar_prefetch=0,
        grid=(bs, heads, n_kv),
        in_specs=[
            # None => squeezed batch/head dims: kernel refs are plain 2D tiles.
            pl.BlockSpec((None, None, n_ctx, attn_ch),
                         lambda b, h, kv: (b, h, 0, 0)),
            pl.BlockSpec((None, None, tkv, attn_ch),
                         lambda b, h, kv: (b, h, kv, 0)),
            pl.BlockSpec((None, None, tkv, attn_ch),
                         lambda b, h, kv: (b, h, kv, 0)),
        ],
        out_specs=pl.BlockSpec((None, None, n_ctx, attn_ch),
                               lambda b, h, kv: (b, h, 0, 0)),
        scratch_shapes=[
            pltpu.VMEM((n_ctx, 1), jnp.float32),         # running max m
            pltpu.VMEM((n_ctx, 1), jnp.float32),         # running sum l
            pltpu.VMEM((n_ctx, attn_ch), jnp.float32),   # running accumulator
        ],
    )

    out_h = pl.pallas_call(
        kernel,
        out_shape=jax.ShapeDtypeStruct((bs, heads, n_ctx, attn_ch), qkv.dtype),
        grid_spec=grid_spec,
        compiler_params=pltpu.CompilerParams(
            dimension_semantics=("parallel", "parallel", "arbitrary"),
            vmem_limit_bytes=vmem_limit),
    )(q, k, v)

    # Final head interleave done by XLA outside the kernel (keeps in-kernel
    # stores lane-dense; matches torch's .reshape(bs, n_ctx, -1) layout).
    return jnp.transpose(out_h, (0, 2, 1, 3)).reshape(bs, n_ctx, out_width)


# ---------------------------------------------------------------------------
# Plain-JAX reference reproducing the PyTorch forward semantics (f32).
# ---------------------------------------------------------------------------
def reference(qkv, heads: int):
    bs, n_ctx, width = qkv.shape
    attn_ch = width // heads // 3
    scale = 1.0 / math.sqrt(math.sqrt(attn_ch))
    qkv = qkv.reshape(bs, n_ctx, heads, -1)
    q = qkv[..., :attn_ch]
    k = qkv[..., attn_ch:2 * attn_ch]
    v = qkv[..., 2 * attn_ch:]
    w = jnp.einsum("bthc,bshc->bhts", q * scale, k * scale)
    w = jax.nn.softmax(w.astype(jnp.float32), axis=-1).astype(w.dtype)
    return jnp.einsum("bhts,bshc->bthc", w, v).reshape(bs, n_ctx, -1)


if __name__ == "__main__":
    key = jax.random.PRNGKey(0)

    # Primary (small) test shape, matching the module layout.
    bs, n_ctx, heads, attn_ch = 2, 8, 4, 8
    width = heads * 3 * attn_ch                  # 96
    qkv = jax.random.normal(key, (bs, n_ctx, width), jnp.float32)

    out = jax.block_until_ready(qkv_multihead_attention(qkv, heads=heads))
    ref = reference(qkv, heads)
    assert out.shape == (bs, n_ctx, heads * attn_ch)
    # bf16 matmul operands + approx reciprocal -> relaxed tolerance vs f32 ref.
    assert jnp.allclose(out, ref, atol=5e-2, rtol=5e-2), "mismatch vs reference"

    # Secondary check: force multiple KV tiles to exercise the online-softmax path.
    n_ctx2 = 256
    qkv2 = jax.random.normal(jax.random.PRNGKey(1), (bs, n_ctx2, width), jnp.float32)
    out2 = jax.block_until_ready(
        qkv_multihead_attention(qkv2, heads=heads, kv_tile=128))
    ref2 = reference(qkv2, heads)
    assert out2.shape == (bs, n_ctx2, heads * attn_ch)
    assert jnp.allclose(out2, ref2, atol=5e-2, rtol=5e-2), "mismatch (tiled KV)"

    print("KERNEL_OK")
</pallas_src>

<mosaic_0001>
module attributes {stable_mosaic.version = 11 : i64} {
  func.func @_flash_head_kernel(%arg0: i32, %arg1: i32, %arg2: i32, %arg3: memref<1x1x8x8xf32, #tpu.memory_space<vmem>>, %arg4: memref<1x1x8x8xf32, #tpu.memory_space<vmem>>, %arg5: memref<1x1x8x8xf32, #tpu.memory_space<vmem>>, %arg6: memref<1x1x8x8xf32, #tpu.memory_space<vmem>>, %arg7: memref<8x1xf32, #tpu.memory_space<vmem>>, %arg8: memref<8x1xf32, #tpu.memory_space<vmem>>, %arg9: memref<8x8xf32, #tpu.memory_space<vmem>>) attributes {dimension_semantics = [#tpu.dimension_semantics<parallel>, #tpu.dimension_semantics<parallel>, #tpu.dimension_semantics<arbitrary>], iteration_bounds = array<i64: 2, 4, 1>, scalar_prefetch = 0 : i64, scratch_operands = 3 : i64, tpu.core_type = #tpu.core_type<tc>, window_params = [{transform_indices = @transform_0, window_bounds = array<i64: 1, 1, 8, 8>}, {transform_indices = @transform_1, window_bounds = array<i64: 1, 1, 8, 8>}, {transform_indices = @transform_2, window_bounds = array<i64: 1, 1, 8, 8>}, {transform_indices = @transform_3, window_bounds = array<i64: 1, 1, 8, 8>}]} {
    %c0_i32 = arith.constant 0 : i32
    %0 = arith.cmpi eq, %arg2, %c0_i32 : i32
    %1 = arith.extui %0 : i1 to i32
    %c0_i32_0 = arith.constant 0 : i32
    %2 = arith.cmpi ne, %1, %c0_i32_0 : i32
    scf.if %2 {
      %cst_30 = arith.constant 0xFF800000 : f32
      %41 = vector.broadcast %cst_30 : f32 to vector<8x1xf32>
      %c0_31 = arith.constant 0 : index
      %c0_32 = arith.constant 0 : index
      %42 = vector.load %arg7[%c0_31, %c0_32] : memref<8x1xf32, #tpu.memory_space<vmem>>, vector<8x1xf32>
      tpu.vector_store %arg7[%c0_31, %c0_32], %41 {strides = array<i32>} : memref<8x1xf32, #tpu.memory_space<vmem>>, vector<8x1xf32>,
      %cst_33 = arith.constant 0.000000e+00 : f32
      %43 = vector.broadcast %cst_33 : f32 to vector<8x1xf32>
      %c0_34 = arith.constant 0 : index
      %c0_35 = arith.constant 0 : index
      %44 = vector.load %arg8[%c0_34, %c0_35] : memref<8x1xf32, #tpu.memory_space<vmem>>, vector<8x1xf32>
      tpu.vector_store %arg8[%c0_34, %c0_35], %43 {strides = array<i32>} : memref<8x1xf32, #tpu.memory_space<vmem>>, vector<8x1xf32>,
      %cst_36 = arith.constant 0.000000e+00 : f32
      %45 = vector.broadcast %cst_36 : f32 to vector<8x8xf32>
      %c0_37 = arith.constant 0 : index
      %c0_38 = arith.constant 0 : index
      %46 = vector.load %arg9[%c0_37, %c0_38] : memref<8x8xf32, #tpu.memory_space<vmem>>, vector<8x8xf32>
      tpu.vector_store %arg9[%c0_37, %c0_38], %45 {strides = array<i32>} : memref<8x8xf32, #tpu.memory_space<vmem>>, vector<8x8xf32>,
    } else {
    }
    %c0 = arith.constant 0 : index
    %c0_1 = arith.constant 0 : index
    %c0_2 = arith.constant 0 : index
    %c0_3 = arith.constant 0 : index
    %3 = vector.load %arg3[%c0, %c0_1, %c0_2, %c0_3] : memref<1x1x8x8xf32, #tpu.memory_space<vmem>>, vector<1x1x8x8xf32>
    %4 = vector.shape_cast %3 : vector<1x1x8x8xf32> to vector<8x8xf32>
    %cst = arith.constant 0.353553385 : f32
    %5 = vector.broadcast %cst : f32 to vector<8x8xf32>
    %6 = arith.mulf %4, %5 : vector<8x8xf32>
    %7 = arith.truncf %6 : vector<8x8xf32> to vector<8x8xbf16>
    %c0_4 = arith.constant 0 : index
    %c0_5 = arith.constant 0 : index
    %c0_6 = arith.constant 0 : index
    %c0_7 = arith.constant 0 : index
    %8 = vector.load %arg4[%c0_4, %c0_5, %c0_6, %c0_7] : memref<1x1x8x8xf32, #tpu.memory_space<vmem>>, vector<1x1x8x8xf32>
    %9 = vector.shape_cast %8 : vector<1x1x8x8xf32> to vector<8x8xf32>
    %10 = arith.truncf %9 : vector<8x8xf32> to vector<8x8xbf16>
    %cst_8 = arith.constant dense<0.000000e+00> : vector<8x8xf32>
    %11 = tpu.matmul %7, %10, %cst_8 {dimension_numbers = #tpu.dot_dimension_numbers<[1], [1], [0], [0], [0, 0, 1, 0], [], []>} : vector<8x8xbf16>, vector<8x8xbf16>, vector<8x8xf32> -> vector<8x8xf32>
    %c0_9 = arith.constant 0 : index
    %c0_10 = arith.constant 0 : index
    %12 = vector.load %arg7[%c0_9, %c0_10] : memref<8x1xf32, #tpu.memory_space<vmem>>, vector<8x1xf32>
    %cst_11 = arith.constant dense<0xFF800000> : vector<8xf32>
    %13 = vector.multi_reduction <maximumf>, %11, %cst_11 [1] : vector<8x8xf32> to vector<8xf32>
    %14 = vector.shape_cast %13 : vector<8xf32> to vector<8x1xf32>
    %15 = arith.maximumf %12, %14 : vector<8x1xf32>
    %16 = arith.subf %12, %15 : vector<8x1xf32>
    %17 = math.exp %16 : vector<8x1xf32>
    %18 = vector.broadcast %15 : vector<8x1xf32> to vector<8x8xf32>
    %19 = arith.subf %11, %18 : vector<8x8xf32>
    %20 = math.exp %19 : vector<8x8xf32>
    %c0_12 = arith.constant 0 : index
    %c0_13 = arith.constant 0 : index
    %21 = vector.load %arg8[%c0_12, %c0_13] : memref<8x1xf32, #tpu.memory_space<vmem>>, vector<8x1xf32>
    %22 = arith.mulf %17, %21 : vector<8x1xf32>
    %cst_14 = arith.constant dense<0.000000e+00> : vector<8xf32>
    %23 = vector.multi_reduction <add>, %20, %cst_14 [1] : vector<8x8xf32> to vector<8xf32>
    %24 = vector.shape_cast %23 : vector<8xf32> to vector<8x1xf32>
    %25 = arith.addf %22, %24 : vector<8x1xf32>
    %c0_15 = arith.constant 0 : index
    %c0_16 = arith.constant 0 : index
    %26 = vector.load %arg8[%c0_15, %c0_16] : memref<8x1xf32, #tpu.memory_space<vmem>>, vector<8x1xf32>
    tpu.vector_store %arg8[%c0_15, %c0_16], %25 {strides = array<i32>} : memref<8x1xf32, #tpu.memory_space<vmem>>, vector<8x1xf32>,
    %c0_17 = arith.constant 0 : index
    %c0_18 = arith.constant 0 : index
    %27 = vector.load %arg9[%c0_17, %c0_18] : memref<8x8xf32, #tpu.memory_space<vmem>>, vector<8x8xf32>
    %28 = vector.broadcast %17 : vector<8x1xf32> to vector<8x8xf32>
    %29 = arith.mulf %28, %27 : vector<8x8xf32>
    %30 = arith.truncf %20 : vector<8x8xf32> to vector<8x8xbf16>
    %c0_19 = arith.constant 0 : index
    %c0_20 = arith.constant 0 : index
    %c0_21 = arith.constant 0 : index
    %c0_22 = arith.constant 0 : index
    %31 = vector.load %arg5[%c0_19, %c0_20, %c0_21, %c0_22] : memref<1x1x8x8xf32, #tpu.memory_space<vmem>>, vector<1x1x8x8xf32>
    %32 = vector.shape_cast %31 : vector<1x1x8x8xf32> to vector<8x8xf32>
    %33 = arith.truncf %32 : vector<8x8xf32> to vector<8x8xbf16>
    %cst_23 = arith.constant dense<0.000000e+00> : vector<8x8xf32>
    %34 = tpu.matmul %30, %33, %cst_23 {dimension_numbers = #tpu.dot_dimension_numbers<[1], [0], [0], [1], [0, 0, 1, 1], [], []>} : vector<8x8xbf16>, vector<8x8xbf16>, vector<8x8xf32> -> vector<8x8xf32>
    %35 = arith.addf %29, %34 : vector<8x8xf32>
    %c0_24 = arith.constant 0 : index
    %c0_25 = arith.constant 0 : index
    %36 = vector.load %arg9[%c0_24, %c0_25] : memref<8x8xf32, #tpu.memory_space<vmem>>, vector<8x8xf32>
    tpu.vector_store %arg9[%c0_24, %c0_25], %35 {strides = array<i32>} : memref<8x8xf32, #tpu.memory_space<vmem>>, vector<8x8xf32>,
    %c0_26 = arith.constant 0 : index
    %c0_27 = arith.constant 0 : index
    %37 = vector.load %arg7[%c0_26, %c0_27] : memref<8x1xf32, #tpu.memory_space<vmem>>, vector<8x1xf32>
    tpu.vector_store %arg7[%c0_26, %c0_27], %15 {strides = array<i32>} : memref<8x1xf32, #tpu.memory_space<vmem>>, vector<8x1xf32>,
    %c0_i32_28 = arith.constant 0 : i32
    %38 = arith.cmpi eq, %arg2, %c0_i32_28 : i32
    %39 = arith.extui %38 : i1 to i32
    %c0_i32_29 = arith.constant 0 : i32
    %40 = arith.cmpi ne, %39, %c0_i32_29 : i32
    scf.if %40 {
      %c0_30 = arith.constant 0 : index
      %c0_31 = arith.constant 0 : index
      %41 = vector.load %arg8[%c0_30, %c0_31] : memref<8x1xf32, #tpu.memory_space<vmem>>, vector<8x1xf32>
      %42 = tpu.reciprocal %41 {approx = true} : vector<8x1xf32> -> vector<8x1xf32>
      %c0_32 = arith.constant 0 : index
      %c0_33 = arith.constant 0 : index
      %43 = vector.load %arg9[%c0_32, %c0_33] : memref<8x8xf32, #tpu.memory_space<vmem>>, vector<8x8xf32>
      %44 = vector.broadcast %42 : vector<8x1xf32> to vector<8x8xf32>
      %45 = arith.mulf %43, %44 : vector<8x8xf32>
      %c0_34 = arith.constant 0 : index
      %c0_35 = arith.constant 0 : index
      %c0_36 = arith.constant 0 : index
      %c0_37 = arith.constant 0 : index
      %46 = vector.load %arg6[%c0_34, %c0_35, %c0_36, %c0_37] : memref<1x1x8x8xf32, #tpu.memory_space<vmem>>, vector<1x1x8x8xf32>
      %47 = vector.shape_cast %46 : vector<1x1x8x8xf32> to vector<8x8xf32>
      %48 = vector.shape_cast %45 : vector<8x8xf32> to vector<1x1x8x8xf32>
      tpu.vector_store %arg6[%c0_34, %c0_35, %c0_36, %c0_37], %48 {strides = array<i32>} : memref<1x1x8x8xf32, #tpu.memory_space<vmem>>, vector<1x1x8x8xf32>,
    } else {
    }
    return
  }
  func.func @transform_0(%arg0: i32, %arg1: i32, %arg2: i32) -> (i32, i32, i32, i32) {
    %c0_i32 = arith.constant 0 : i32
    %c0_i32_0 = arith.constant 0 : i32
    %c0_i32_1 = arith.constant 0 : i32
    return %arg0, %arg1, %c0_i32, %c0_i32_0 : i32, i32, i32, i32
  }
  func.func @transform_1(%arg0: i32, %arg1: i32, %arg2: i32) -> (i32, i32, i32, i32) {
    %c0_i32 = arith.constant 0 : i32
    %c0_i32_0 = arith.constant 0 : i32
    return %arg0, %arg1, %arg2, %c0_i32 : i32, i32, i32, i32
  }
  func.func @transform_2(%arg0: i32, %arg1: i32, %arg2: i32) -> (i32, i32, i32, i32) {
    %c0_i32 = arith.constant 0 : i32
    %c0_i32_0 = arith.constant 0 : i32
    return %arg0, %arg1, %arg2, %c0_i32 : i32, i32, i32, i32
  }
  func.func @transform_3(%arg0: i32, %arg1: i32, %arg2: i32) -> (i32, i32, i32, i32) {
    %c0_i32 = arith.constant 0 : i32
    %c0_i32_0 = arith.constant 0 : i32
    %c0_i32_1 = arith.constant 0 : i32
    return %arg0, %arg1, %c0_i32, %c0_i32_0 : i32, i32, i32, i32
  }
}

</mosaic_0001>

<bundles_post_ra>
// kernel: tpu_custom_call.1
= control target key start
LH: loop header
LB: loop body
LE: loop exit
PB: predicated region body
PF: predicated region fallthrough
CT: control target
= control target key end

     0   :  { %s1269_s0 = inlined_call_operand.hbm [shape: f32[2,4,8,8], index: 0, kind: input, shape index: {}]   ;;  %s1270_s1 = inlined_call_operand.hbm [shape: f32[2,4,8,8], index: 1, kind: input, shape index: {}]   ;;  %s1271_s2 = inlined_call_operand.hbm [shape: f32[2,4,8,8], index: 2, kind: input, shape index: {}]   ;;  %s1272_s3 = inlined_call_operand.hbm [shape: f32[2,4,8,8], index: 3, kind: output, shape index: {}]  }
   0x1   :  { %1282 = sst [smem:[#allocation21_spill]] %s1270_s1 }
   0x2   :  { %8 = vsyncpa [#allocation6], 0 }
   0x3   :  { %10 = vsyncpa [#allocation6 + $0x1], 0 }
   0x4   :  { %11 = vsyncpa [#allocation9], 0 }
   0x5   :  { %13 = vsyncpa [#allocation9 + $0x1], 0 }
   0x6   :  { %14 = vsyncpa [#allocation7], 0 }
   0x7   :  { %16 = vsyncpa [#allocation7 + $0x1], 0  ;;  %s971_s12 = smov 0   ;;  %s973_s13 = smov 0  }
   0x8   :  { %s975_s14 = smov 0   ;;  %s977_s15 = smov 0  }
   0x9   :  { %s979_s16 = smov 0   ;;  %s981_s17 = smov 0  }
   0xa   :  { %s983_s18 = smov 0   ;;  %s985_s19 = smov 0  }
   0xb LB: > { %1283 = sst [smem:[#allocation15_spill]] %s933_s17  ;;  %s1012_s20 = sadd.s32 4294967295, %s941_s19   ;;  %s941_s19 = sphi %s985_s19, %s22_s19   ;;  %s937_s18 = sphi %s983_s18, %s1310_s18   ;;  %s933_s17 = sphi %s981_s17, %s1309_s17   ;;  %s929_s16 = sphi %s979_s16, %s1308_s16   ;;  %s925_s15 = sphi %s977_s15, %s1307_s15   ;;  %s921_s14 = sphi %s975_s14, %s1313_s14   ;;  %s917_s13 = sphi %s973_s13, %s1312_s13   ;;  %s913_s12 = sphi %s971_s12, %s1311_s12  }
   0xc   : > { %1284 = sst [smem:[#allocation16_spill]] %s937_s18  ;;  %s609_s21 = sadd.s32 4294967294, %s941_s19  }
   0xd   : > { %s37_s22 = sadd.s32 1, %s933_s17  ;;  %s41_s23 = sadd.s32 1, %s937_s18 }
   0xe   : > { %p39_p0 = scmp.ge.s32.totalorder %s37_s22, 4  ;;  %s50_s24 = sadd.s32 1, %s921_s14 }
   0xf   : > { %p57_p1 = scmp.ne.s32.totalorder %s921_s14, %s917_s13  ;;  %p58_p2 = scmp.eq.s32.totalorder %s941_s19, 0 }
  0x10   : > { %s1315_s22 = smov (%p39_p0, %s37_s22), 0  ;;  %s1317_s23 = smov (!%p39_p0, %s41_s23), %s937_s18 }
  0x11   : > { %1285 = sst [smem:[#allocation17_spill]] %s1315_s22  ;;  %s46_s25 = ssub.s32 %s933_s17, %s1315_s22 }
  0x12   : > { %p1026_p3 = por %p58_p2, %p57_p1  ;;  %p43_p4 = scmp.ge.s32.totalorder %s1317_s23, 2 }
  0x13   : > { %p63_p5 = scmp.ne.s32.totalorder %s917_s13, %s913_s12  ;;  %p64_p6 = scmp.eq.s32.totalorder %s1012_s20, 0 }
  0x14   : > { %p149_p7 = scmp.eq.s32.totalorder %s1012_s20, 7  ;;  %s1319_s23 = smov (%p43_p4, %s1317_s23), 0 }
  0x15   : > { %1287 = sst [smem:[#allocation18_spill]] %s1319_s23  ;;  %p1036_p8 = por %p64_p6, %p63_p5 }
  0x16   : > { %p1040_p9 = por %p149_p7, %p57_p1  ;;  %s45_s29 = ssub.s32 %s937_s18, %s1319_s23 }
  0x17   : > { %s1288_s27 = scalar_select %p1036_p8, 1, 0 }
  0x18   : > { %s1289_s28 = scalar_select %p1040_p9, 1, 0 }
  0x19   : > { %p155_p10 = scmp.eq.s32.totalorder %s609_s21, 7  ;;  %s47_s30 = sor.u32 %s46_s25, %s45_s29 }
  0x1a   : > { %p48_p11 = scmp.eq.s32.totalorder %s47_s30, 0  ;;  %p671_p13 = scmp.lt.s32.totalorder %s941_s19, 8 }
  0x1b   : > { %p1046_p12 = por %p155_p10, %p63_p5  ;;  %s1273_s5 = sand.u32 1, %s921_s14  }
  0x1c   : > { %s1053_s6 = scalar_select %p48_p11, %s921_s14, %s50_s24  }
  0x1d   : > { %s1290_s4 = scalar_select %p1046_p12, 1, 0 }
  0x1e   : > { %1292 = sst [smem:[#allocation20_spill]] %s1053_s6  ;;  %s1057_s7 = sshll.u32 %s1273_s5, 3 }
  0x1f   : > { %1291 = sst [smem:[#allocation19_spill]] %s1290_s4  ;;  %s613_s8 = sshll.u32 %s937_s18, 2 }
  0x20   : > { %s184_s9 = sadd.s32 %s933_s17, %s613_s8  ;;  %p1063_p0 = pnand %p671_p13, %p1026_p3 }
  0x21   : > { %s1067_s11 = sshll.u32 %s184_s9, 7  ;;  %s195_s21 = sand.u32 1, %s941_s19  }
  0x22   : > { %s1293_s10 = scalar_select %p1063_p0, 1, 0 }
  0x23   : > { %s1294_s1 = sld [smem:[#allocation21_spill]]  ;;  %s199_s30 = scalar_lea.vmem [#allocation8], %s1057_s7 }
  0x24   : > { %s209_s26 = sshll.u32 %s199_s30, 4  ;;  %s1081_s8 = scalar_lea.sflag [#allocation9], %s195_s21  ;;  %s1078_s26 = int_to_ptr.vmem [resolvable:$true] %s209_s26 }
  0x25   : > { %p1087_p4 = pneg %p1063_p0 }
  0x29   : > { %s1074_s24 = scalar_lea.hbm %s1294_s1, %s1067_s11  ;;  %s754_s30 = scalar_lea.hbm %s1294_s1, 1024 }
  0x2a   : > { %s749_s9 = scalar_lea.hbm %s1074_s24, 128  ;;  %p755_p7 = scmp.lt.u32.totalorder %s1074_s24, %s1294_s1 }
  0x2b   : > { %p750_p3 = scmp.ne.s32.totalorder %s1074_s24, %s749_s9  ;;  %p756_p10 = scmp.lt.u32.totalorder %s754_s30, %s749_s9 }
  0x2c   : > { %p758_p13 = scmp.lt.u32.totalorder %s749_s9, %s1074_s24 }
  0x2d   : > { %p752_p5 = pnand %p1087_p4, %p750_p3  ;;  %p757_p11 = por %p756_p10, %p755_p7 }
  0x2f   : > { %p753_p6 = pneg %p752_p5  ;;  %p759_p1 = por %p758_p13, %p757_p11 }
  0x31   : > { %p760_p2 = pnand %p759_p1, %p753_p6 }
  0x33   : > { %763 = shalt.err (!%p760_p2)
}
  0x34   : > { %s764_s21 = scalar_lea.vmem %s1078_s26, 128  ;;  %s943_s25 = smov [#allocation8]  }
  0x35   : > { %p765_p3 = scmp.ne.s32.totalorder %s1078_s26, %s764_s21  ;;  %s769_s29 = sshll.u32 %s943_s25, 4  ;;  %s770_s29 = int_to_ptr.vmem [resolvable:$false] %s769_s29 }
  0x36   : > { %s771_s22 = scalar_lea.vmem %s770_s29, 256  ;;  %p772_p9 = scmp.lt.s32.totalorder %s1078_s26, %s770_s29 }
  0x37   : > { %p767_p5 = pnand %p765_p3, %p1087_p4  ;;  %p773_p8 = scmp.lt.s32.totalorder %s771_s22, %s764_s21 }
  0x39   : > { %p768_p12 = pneg %p767_p5  ;;  %p774_p7 = por %p773_p8, %p772_p9 }
  0x3b   : > { %p775_p10 = pnand %p774_p7, %p768_p12 }
  0x3d   : > { %778 = shalt.err (!%p775_p10)
}
  0x3e   : > { %663 = dma.hbm_to_vmem [thread:$0]  (!%p1063_p0), %s1074_s24, 128, %s1078_s26, %s1081_s8  }
  0x3f   : > { %p1296_p1 = scmp.lt.s32.totalorder %s941_s19, 9  ;;  %p1297_p2 = scmp.ge.s32.totalorder %s941_s19, 1 }
  0x40   : > { %s1123_s21 = scalar_lea.hbm %s1269_s0, %s1067_s11  ;;  %s179_s25 = scalar_lea.vmem [#allocation5], %s1057_s7 }
  0x41   : > { %p1115_p6 = pnand %p1297_p2, %p1296_p1  ;;  %s188_s29 = sshll.u32 %s179_s25, 4  ;;  %s1126_s29 = int_to_ptr.vmem [resolvable:$true] %s188_s29 }
  0x42   : > { %s1132_s22 = scalar_lea.hbm %s1271_s2, %s1067_s11  ;;  %s1299_s1 = sand.u32 1, %s921_s14  }
  0x43   : > { %s1298_s23 = scalar_select %p1115_p6, 1, 0 }
  0x44   : > { %s176_s18 = scalar_lea.sflag [#allocation6], %s1299_s1  ;;  %s779_s17 = scalar_lea.hbm %s1123_s21, 128 }
  0x45   : > { %p780_p8 = scmp.ne.s32.totalorder %s1123_s21, %s779_s17  ;;  %s784_s6 = scalar_lea.hbm %s1269_s0, 1024 }
  0x46   : > { %p785_p11 = scmp.lt.u32.totalorder %s1123_s21, %s1269_s0  ;;  %p786_p13 = scmp.lt.u32.totalorder %s784_s6, %s779_s17 }
  0x47   : > { %p782_p9 = pnand %p780_p8, %p1087_p4  ;;  %p788_p5 = scmp.lt.u32.totalorder %s779_s17, %s1123_s21 }
  0x48   : > { %p787_p3 = por %p786_p13, %p785_p11 }
  0x49   : > { %p783_p12 = pneg %p782_p9 }
  0x4a   : > { %p789_p7 = por %p788_p5, %p787_p3 }
  0x4c   : > { %p790_p10 = pnand %p789_p7, %p783_p12 }
  0x4e   : > { %793 = shalt.err (!%p790_p10)
}
  0x4f   : > { %s794_s1 = scalar_lea.vmem %s1126_s29, 128  ;;  %s944_s11 = smov [#allocation5]  }
  0x50   : > { %p795_p1 = scmp.ne.s32.totalorder %s1126_s29, %s794_s1  ;;  %s799_s24 = sshll.u32 %s944_s11, 4  ;;  %s800_s24 = int_to_ptr.vmem [resolvable:$false] %s799_s24 }
  0x51   : > { %s801_s4 = scalar_lea.vmem %s800_s24, 256  ;;  %p802_p9 = scmp.lt.s32.totalorder %s1126_s29, %s800_s24 }
  0x52   : > { %p797_p2 = pnand %p795_p1, %p1087_p4  ;;  %p803_p6 = scmp.lt.s32.totalorder %s801_s4, %s794_s1 }
  0x54   : > { %p798_p8 = pneg %p797_p2  ;;  %p804_p11 = por %p803_p6, %p802_p9 }
  0x56   : > { %p805_p13 = pnand %p804_p11, %p798_p8 }
  0x58   : > { %808 = shalt.err (!%p805_p13)
}
  0x59   : > { %660 = dma.hbm_to_vmem [thread:$0]  (!%p1063_p0), %s1123_s21, 128, %s1126_s29, %s176_s18  }
  0x5a   : > { %s220_s17 = scalar_lea.vmem [#allocation10], %s1057_s7  ;;  %s809_s26 = scalar_lea.hbm %s1132_s22, 128 }
  0x5b   : > { %s230_s6 = sshll.u32 %s220_s17, 4  ;;  %p810_p12 = scmp.ne.s32.totalorder %s1132_s22, %s809_s26  ;;  %s231_s6 = int_to_ptr.vmem [resolvable:$true] %s230_s6 }
  0x5c   : > { %s814_s25 = scalar_lea.hbm %s1271_s2, 1024  ;;  %p815_p5 = scmp.lt.u32.totalorder %s1132_s22, %s1271_s2 }
  0x5d   : > { %p812_p6 = pnand %p810_p12, %p1087_p4  ;;  %p816_p7 = scmp.lt.u32.totalorder %s814_s25, %s809_s26 }
  0x5e   : > { %p818_p1 = scmp.lt.u32.totalorder %s809_s26, %s1132_s22 }
  0x5f   : > { %p813_p3 = pneg %p812_p6  ;;  %p817_p10 = por %p816_p7, %p815_p5 }
  0x61   : > { %p819_p2 = por %p818_p1, %p817_p10 }
  0x63   : > { %p820_p8 = pnand %p819_p2, %p813_p3 }
  0x65   : > { %823 = shalt.err (!%p820_p8)
}
  0x66   : > { %s824_s18 = scalar_lea.vmem %s231_s6, 128  ;;  %s945_s7 = smov [#allocation10]  }
  0x67   : > { %p825_p9 = scmp.ne.s32.totalorder %s231_s6, %s824_s18  ;;  %s829_s21 = sshll.u32 %s945_s7, 4  ;;  %s830_s21 = int_to_ptr.vmem [resolvable:$false] %s829_s21 }
  0x68   : > { %s831_s29 = scalar_lea.vmem %s830_s21, 256  ;;  %p832_p12 = scmp.lt.s32.totalorder %s231_s6, %s830_s21 }
  0x69   : > { %p827_p11 = pnand %p825_p9, %p1087_p4  ;;  %p833_p6 = scmp.lt.s32.totalorder %s831_s29, %s824_s18 }
  0x6b   : > { %p828_p13 = pneg %p827_p11  ;;  %p834_p0 = por %p833_p6, %p832_p12 }
  0x6d   : > { %p835_p5 = pnand %p834_p0, %p828_p13 }
  0x6f   : > { %838 = shalt.err (!%p835_p5)
}
  0x70   : > { %p1300_p7 = scmp.ne.s32.totalorder %s1293_s10, 0  ;;  %p1301_p3 = scmp.ne.s32.totalorder %s1298_s23, 0 }
  0x71   : > { %s1179_s5 = sand.u32 (!%p1301_p3), 1, %s917_s13   ;;  %p1302_p0 = scmp.ne.s32.totalorder (!%p1301_p3), %s1288_s27, 0 }
  0x72   : > { %666 = dma.hbm_to_vmem [thread:$0]  (!%p1300_p7), %s1132_s22, 128, %s231_s6, %s1081_s8  }
  0x73   : > { %239 = sbr.rel (%p1301_p3) target bundleno = 945 (0x3b1), region = 32  ;;  %s1182_s24 = sshll.u32 (!%p1301_p3), %s1179_s5, 3 }
  0x74   : > { %s242_s4 = scalar_lea.sflag (!%p1301_p3), [#allocation6], %s1179_s5  ;;  %s245_s17 = scalar_lea.vmem (!%p1301_p3), [#allocation5], %s1182_s24 }
  0x7a   : > { %900 = dma.done.wait (%p1302_p0), %s242_s4, 128  }
  0x7b   : > { %902 = vsyncadd (%p1302_p0), %s242_s4, 4294967168  ;;  %s250_s10 = sand.u32 1, %s1012_s20   ;;  %s254_s23 = scalar_lea.vmem [#allocation8], %s1182_s24 }
  0x7c   : > { %s251_s8 = scalar_lea.sflag [#allocation9], %s250_s10 }
  0x7d   : > { %904 = dma.done.wait (%p1302_p0), %s251_s8, 256  }
  0x7e   : > { %906 = vsyncadd (%p1302_p0), %s251_s8, 4294967040  ;;  %vm304_vm0 = vcmask 64512   ;;  %v946_v0 = vmov 0.0   ;;  %vm947_vm1 = vmmov 0   ;;  %v309_v1 = vld [vmem:[%s254_s23] sm:$0xff]  ;;  %v306_v2 = vld [vmem:[%s245_s17] sm:$0xff] }
  0x7f   : > { %637 = vmatprep.subr.bf16.mxu0 %v946_v0  ;;  %305 = vst.msk [vmem:[#allocation4] sm:$0xff] %vm304_vm0, %v946_v0  ;;  %639 = vmatprep.mubr.msk.bf16.mxu0 %vm947_vm1, %v946_v0  ;;  %v310_v3 = vpack.c.bf16 %v309_v1, %v309_v1  ;;  %v307_v5 = vmul.f32 0.35355338, %v306_v2  ;;  %vm301_vm2 = vcmask 7168   ;;  %v948_v7 = vmov -inf   ;;  %s263_s20 = scalar_lea.vmem [#allocation10], %s1182_s24 }
  0x80   : > { %643 = vmatprep.subr.bf16.mxu1 %v946_v0  ;;  %645 = vmatprep.mubr.msk.bf16.mxu1 %vm947_vm1, %v946_v0  ;;  %302 = vst.msk [vmem:[#allocation2] sm:$0xff] %vm301_vm2, %v948_v7  ;;  %303 = vst.msk [vmem:[#allocation3] sm:$0xff] %vm301_vm2, %v946_v0  ;;  %v949_v13 = vmov 0   ;;  %v390_v18 = vld [vmem:[%s263_s20] sm:$0xff]  ;;  %vm395_vm3 = vcmask 1043456   ;;  %s629_s27 = sshll.u32 %s929_s16, 2 }
  0x81   : > { %v316_v4 = vsel %vm304_vm0, %v310_v3, 0  ;;  %v308_v6 = vpack.c.bf16 %v307_v5, %v307_v5  ;;  %741 = vset.pattern.permute.xlu0 %v949_v13  ;;  %742 = vset.pattern.permute.xlu1 %v949_v13  ;;  %v391_v19 = vpack.c.bf16 %v390_v18, %v390_v18  ;;  %s467_s22 = sadd.s32 %s925_s15, %s629_s27  ;;  %s295_s26 = scalar_lea.vmem [#allocation11], %s1182_s24 }
  0x82   : > { %638 = vmatpush3.bf16.xpose.msra.mxu0 %v316_v4  ;;  %s630_s6 = sshll.u32 %s467_s22, 7  ;;  %s471_s9 = sshll.u32 %s295_s26, 4  ;;  %s1216_s9 = int_to_ptr.vmem [resolvable:$true] %s471_s9 }
  0x83   : > { %v397_v20 = vsel %vm395_vm3, %v391_v19, 0  ;;  %s1214_s1 = scalar_lea.hbm %s1272_s3, %s630_s6  ;;  %s456_s16 = scalar_lea.sflag [#allocation7], %s1179_s5 }
  0x84   : > { %644 = vmatpush3.bf16.msra.mxu1 %v397_v20  ;;  %s839_s15 = scalar_lea.vmem %s1216_s9, 128  ;;  %p1303_p10 = scmp.ne.s32.totalorder %s1289_s28, 0 }
  0x85   : > { %p840_p4 = scmp.ne.s32.totalorder %s1216_s9, %s839_s15  ;;  %s950_s11 = smov [#allocation11]  }
  0x86   : > { %v382_v35 = vld [vmem:[#allocation4] sm:$0xff]  ;;  %s843_s18 = sshll.u32 %s950_s11, 4  ;;  %s844_s18 = int_to_ptr.vmem [resolvable:$false] %s843_s18 }
  0x87   : > { %v358_v14 = vld [vmem:[#allocation2] sm:$0xff]  ;;  %v374_v29 = vld [vmem:[#allocation3] sm:$0xff]  ;;  %p841_p1 = pnand %p840_p4, %p1303_p10  ;;  %s845_s7 = scalar_lea.vmem %s844_s18, 256 }
  0x88   : > { %p846_p8 = scmp.lt.s32.totalorder %s1216_s9, %s844_s18  ;;  %p847_p9 = scmp.lt.s32.totalorder %s845_s7, %s839_s15 }
  0x89   : > { %640 = vmatmul.mubr.msk.bf16.vlgmr.msra.gmra.mrb[0].mxu0 %vm304_vm0, %v308_v6  ;;  %p842_p2 = pneg %p841_p1 }
  0x8a   : > { %p848_p11 = por %p847_p9, %p846_p8 }
  0x8c   : > { %p849_p13 = pnand %p848_p11, %p842_p2 }
 0x15c   : > { %v352_v8 = vpop.f32.mrb[0].mxu0 }
 0x15d   : > { %v641_v9 = vpop.f32.mrb[1].mxu0  ;;  %v359_v10 = vsel %vm304_vm0, %v352_v8, -inf }
 0x15e   : > { %360 = vmax.xlane.f32.xlu0 %v359_v10  ;;  %v355_v11 = vpop.f32.mrb[2].mxu0 }
 0x15f   : > { %v642_v12 = vpop.f32.mrb[3].mxu0 }
 0x1eb   : > { %v361_v15 = vpop.xlane.xlu0 %360 }
 0x1ec   : > { %v362_v16 = vmax.f32 %v358_v14, %v361_v15 }
 0x1ee   : > { %v363_v17 = vsub.f32 %v358_v14, %v362_v16  ;;  %441 = vst.msk [vmem:[#allocation2] sm:$0xff] %vm301_vm2, %v362_v16  ;;  %368 = vperm.xlu0 %741, %v362_v16  }
 0x1f0   : > { %v364_v27 = vmul.f32 1.442695, %v363_v17 }
 0x26d   : > { %v369_v21 = vpop.permute.xlu0 %368 }
 0x26e   : > { %v371_v22 = vsub.f32 %v352_v8, %v369_v21 }
 0x270   : > { %v372_v23 = vmul.f32 1.442695, %v371_v22 }
 0x272   : > { %743 = vpow2.f32 %v372_v23 }
 0x273   : > { %745 = vpow2.f32 %v364_v27 }
 0x27c   : > { %v744_v24 = vpop.eup %743 }
 0x27d   : > { %v376_v25 = vsel %vm304_vm0, %v744_v24, 0.0  ;;  %v389_v26 = vpack.c.bf16 %v744_v24, %v744_v24  ;;  %v746_v28 = vpop.eup %745 }
 0x27e   : > { %377 = vadd.xlane.f32.xlu1 %v376_v25  ;;  %v375_v30 = vmul.f32 %v746_v28, %v374_v29 }
 0x27f   : > { %646 = vmatmul.mubr.msk.bf16.vlgmr.msra.gmra.mrb[0].mxu1 %vm304_vm0, %v389_v26 }
 0x28f   : > { %385 = vperm.xlu1 %742, %v746_v28  }
 0x30b   : > { %v378_v31 = vpop.xlane.xlu1 %377 }
 0x30c   : > { %v379_v32 = vadd.f32 %v378_v31, %v375_v30 }
 0x30e   : > { %381 = vst.msk [vmem:[#allocation3] sm:$0xff] %vm301_vm2, %v379_v32 }
 0x30f   : > { %v386_v36 = vpop.permute.xlu1 %385 }
 0x310   : > { %v388_v37 = vmul.f32 %v386_v36, %v382_v35 }
 0x315   : > { %v445_v33 = vld [vmem:[#allocation3] sm:$0xff] }
 0x316   : > { %747 = vrcp.f32 %v445_v33 }
 0x320   : > { %v748_v34 = vpop.eup %747 }
 0x321   : > { %450 = vperm.xlu1 %742, %v748_v34  }
 0x352   : > { %v433_v38 = vpop.f32.mrb[0].mxu1 }
 0x353   : > { %v439_v39 = vadd.f32 %v433_v38, %v388_v37  ;;  %v647_v40 = vpop.f32.mrb[1].mxu1 }
 0x354   : > { %v436_v41 = vpop.f32.mrb[2].mxu1 }
 0x355   : > { %440 = vst.msk [vmem:[#allocation4] sm:$0xff] %vm304_vm0, %v439_v39  ;;  %v648_v42 = vpop.f32.mrb[3].mxu1 }
 0x35c   : > { %v447_v43 = vld [vmem:[#allocation4] sm:$0xff] }
 0x3a0   : > { %v451_v44 = vpop.permute.xlu1 %450 }
 0x3a1   : > { %v453_v45 = vmul.f32 %v451_v44, %v447_v43 }
 0x3a3   : > { %454 = vst.msk [vmem:[%s295_s26] sm:$0xff] %vm304_vm0, %v453_v45 }
 0x3a4   : > { %852 = shalt.err (!%p849_p13)
}
 0x3a5   : > { %s853_s21 = scalar_lea.hbm %s1214_s1, 128  ;;  %s857_s24 = scalar_lea.hbm %s1272_s3, 1024 }
 0x3a6   : > { %p854_p12 = scmp.ne.s32.totalorder %s1214_s1, %s853_s21  ;;  %p858_p7 = scmp.lt.u32.totalorder %s1214_s1, %s1272_s3 }
 0x3a7   : > { %p859_p3 = scmp.lt.u32.totalorder %s857_s24, %s853_s21  ;;  %p861_p4 = scmp.lt.u32.totalorder %s853_s21, %s1214_s1 }
 0x3a8   : > { %p855_p6 = pnand %p854_p12, %p1303_p10 }
 0x3a9   : > { %p860_p0 = por %p859_p3, %p858_p7 }
 0x3aa   : > { %p856_p5 = pneg %p855_p6 }
 0x3ab   : > { %p862_p1 = por %p861_p4, %p860_p0 }
 0x3ad   : > { %p863_p2 = pnand %p862_p1, %p856_p5 }
 0x3af   : > { %866 = shalt.err (!%p863_p2)
}
 0x3b0   : > { %655 = dma.vmem_to_hbm [thread:$0]  (%p1303_p10), %s1216_s9, 128, %s1214_s1, %s456_s16  }
 0x3b1 PF: > { %s1304_s10 = sld [smem:[#allocation19_spill]]  ;;  %p672_p8 = scmp.ge.s32.totalorder %s941_s19, 2 }
 0x3b2   : > { %s483_s8 = sand.u32 1, %s913_s12  }
 0x3b3   : > { %s484_s23 = scalar_lea.sflag [#allocation7], %s483_s8 }
 0x3b7   : > { %p1305_p9 = scmp.ne.s32.totalorder %s1304_s10, 0 }
 0x3b9   : > { %p668_p11 = pnand %p672_p8, %p1305_p9 }
 0x3bb   : > { %908 = dma.done.wait (!%p668_p11), %s484_s23, 128  }
 0x3bc   : > { %910 = vsyncadd (!%p668_p11), %s484_s23, 4294967168  ;;  %s22_s19 = sadd.s32 1, %s941_s19   ;;  %s1306_s28 = sld [smem:[#allocation20_spill]] }
 0x3bd   : > { %p19_p13 = scmp.ge.s32.totalorder %s22_s19, 10   ;;  %s1307_s15 = sld [smem:[#allocation15_spill]] }
 0x3be   : > { %s1308_s16 = sld [smem:[#allocation16_spill]]  ;;  %s1309_s17 = sld [smem:[#allocation17_spill]] }
 0x3bf   : > { %s1310_s18 = sld [smem:[#allocation18_spill]]  ;;  %s1311_s12 = smov %s917_s13 }
 0x3c0   : > { %s1312_s13 = smov %s921_s14  ;;  %21 = sbr.rel (!%p19_p13) target bundleno = 11 (0xb), region = 109 }
 0x3c2   : > { %s1313_s14 = smov %s1306_s28 }
 0x3c7   :  { %489 = vsyncpa [#allocation6], 1 }
 0x3c8   :  { %491 = vsyncpa [#allocation6 + $0x1], 1 }
 0x3c9   :  { %492 = vsyncpa [#allocation9], 1 }
 0x3ca   :  { %494 = vsyncpa [#allocation9 + $0x1], 1 }
 0x3cb   :  { %495 = vsyncpa [#allocation7], 1 }
 0x3cc   :  { %497 = vsyncpa [#allocation7 + $0x1], 1 }

</bundles_post_ra>
